<compile_context>
chip_gen: v6e
topology: v6e:2x2x1
jax: 0.10.0
libtpu: 0.0.40
codegen_flags: <defaults>
</compile_context>

<pallas_src>
import jax
import jax.numpy as jnp
from jax.experimental import pallas as pl
from jax.experimental.pallas import tpu as pltpu


def mlp_kernel(x_ref, w1_ref, b1_ref, w2_ref, b2_ref, w3_ref, b3_ref, o_ref):
    # Layer 1: MXU matmul (bf16 operands, f32 accumulate), bias+ReLU in f32 (VPU).
    h1 = jnp.dot(x_ref[...], w1_ref[...], preferred_element_type=jnp.float32)
    h1 = jnp.maximum(h1 + b1_ref[...], 0.0)
    # Layer 2: same pattern.
    h2 = jnp.dot(h1.astype(w2_ref.dtype), w2_ref[...],
                 preferred_element_type=jnp.float32)
    h2 = jnp.maximum(h2 + b2_ref[...], 0.0)
    # Layer 3: N=1 matmul is MXU-wasteful -> VPU multiply + XLU lane reduce.
    out = jnp.sum(h2 * w3_ref[...], axis=-1, keepdims=True)
    o_ref[...] = (out + b3_ref[0, 0]).astype(o_ref.dtype)


def _round_up(x, m):
    return (x + m - 1) // m * m


def simple_conv_net_forward(x, params, *, block_b=512):
    """Fused MLP forward. x: (B, in_size) float32. Returns (B, 1) float32."""
    w1, b1, w2, b2, w3, b3 = params
    B, in_size = x.shape
    hidden = w1.shape[1]

    # Batch tile: multiple of 16 (bf16 sublane packing), capped at block_b
    # (512 keeps per-buffer VMEM tiny and is well inside v7x's 64 MiB).
    tb = min(block_b, _round_up(B, 16))
    b_pad = _round_up(B, tb)
    if b_pad != B:
        x = jnp.pad(x, ((0, b_pad - B), (0, 0)))
    nb = b_pad // tb

    # bf16 MXU operands; accumulation, biases and elementwise stay f32.
    x_bf = x.astype(jnp.bfloat16)
    w1_bf = w1.astype(jnp.bfloat16)
    w2_bf = w2.astype(jnp.bfloat16)
    w3_row = w3.reshape(1, hidden).astype(jnp.float32)  # layer-3 VPU path, keep f32
    b3_s = b3.reshape(1, 1).astype(jnp.float32)         # SMEM scalar

    flops = 2 * b_pad * (in_size * hidden + hidden * hidden + hidden)
    bytes_accessed = (x_bf.size * 2 + w1_bf.size * 2 + w2_bf.size * 2
                      + w3_row.size * 4 + b1.size * 4 + b2.size * 4 + 4
                      + b_pad * 4)

    out = pl.pallas_call(
        mlp_kernel,
        out_shape=jax.ShapeDtypeStruct((b_pad, 1), jnp.float32),
        grid=(nb,),
        in_specs=[
            pl.BlockSpec((tb, in_size), lambda i: (i, 0)),      # x: tiled on batch
            pl.BlockSpec((in_size, hidden), lambda i: (0, 0)),  # weights resident
            pl.BlockSpec((1, hidden), lambda i: (0, 0)),
            pl.BlockSpec((hidden, hidden), lambda i: (0, 0)),
            pl.BlockSpec((1, hidden), lambda i: (0, 0)),
            pl.BlockSpec((1, hidden), lambda i: (0, 0)),
            pl.BlockSpec(memory_space=pltpu.MemorySpace.SMEM),  # b3 scalar
        ],
        out_specs=pl.BlockSpec((tb, 1), lambda i: (i, 0)),
        compiler_params=pltpu.CompilerParams(
            dimension_semantics=("parallel",)),
        cost_estimate=pl.CostEstimate(
            flops=flops, transcendentals=0, bytes_accessed=bytes_accessed),
    )(x_bf, w1_bf, b1, w2_bf, b2, w3_row, b3_s)

    return out[:B]


def init_params(key, in_size=9, hidden=64):
    """Deterministic PyTorch-style init: U(-1/sqrt(fan_in), 1/sqrt(fan_in))."""
    ks = jax.random.split(key, 6)

    def lin(kw, kb, fan_in, fan_out):
        bound = 1.0 / jnp.sqrt(jnp.float32(fan_in))
        w = jax.random.uniform(kw, (fan_in, fan_out), jnp.float32, -bound, bound)
        b = jax.random.uniform(kb, (1, fan_out), jnp.float32, -bound, bound)
        return w, b

    w1, b1 = lin(ks[0], ks[1], in_size, hidden)
    w2, b2 = lin(ks[2], ks[3], hidden, hidden)
    w3, b3 = lin(ks[4], ks[5], hidden, 1)
    return (w1, b1, w2, b2, w3, b3)


def reference_forward(x, params):
    w1, b1, w2, b2, w3, b3 = params
    h1 = jnp.maximum(x @ w1 + b1, 0.0)
    h2 = jnp.maximum(h1 @ w2 + b2, 0.0)
    return h2 @ w3 + b3


if __name__ == "__main__":
    key = jax.random.PRNGKey(0)
    k_x, k_p = jax.random.split(key)

    in_size, hidden, batch = 9, 64, 40
    x = jax.random.normal(k_x, (batch, in_size), dtype=jnp.float32)
    params = init_params(k_p, in_size=in_size, hidden=hidden)

    # Small block_b so the test exercises a multi-step grid + batch padding.
    out = simple_conv_net_forward(x, params, block_b=16)
    out = jax.block_until_ready(out)

    ref = reference_forward(x, params)
    assert out.shape == (batch, 1)
    # bf16 MXU operands -> compare against the f32 reference with a loose bound.
    assert jnp.allclose(out, ref, atol=5e-2, rtol=5e-2), (
        float(jnp.max(jnp.abs(out - ref))))

    print("KERNEL_OK")
</pallas_src>

<mosaic_0001>
module attributes {stable_mosaic.version = 11 : i64} {
  func.func @mlp_kernel(%arg0: i32, %arg1: memref<16x9xbf16, #tpu.memory_space<vmem>>, %arg2: memref<9x64xbf16, #tpu.memory_space<vmem>>, %arg3: memref<1x64xf32, #tpu.memory_space<vmem>>, %arg4: memref<64x64xbf16, #tpu.memory_space<vmem>>, %arg5: memref<1x64xf32, #tpu.memory_space<vmem>>, %arg6: memref<1x64xf32, #tpu.memory_space<vmem>>, %arg7: memref<1x1xf32, #tpu.memory_space<smem>>, %arg8: memref<16x1xf32, #tpu.memory_space<vmem>>) attributes {dimension_semantics = [#tpu.dimension_semantics<parallel>], iteration_bounds = array<i64: 3>, scalar_prefetch = 0 : i64, scratch_operands = 0 : i64, tpu.core_type = #tpu.core_type<tc>, window_params = [{transform_indices = @transform_0, window_bounds = array<i64: 16, 9>}, {pipeline_mode = #tpu.pipeline_mode<synchronous>, transform_indices = @transform_1, window_bounds = array<i64: 9, 64>}, {pipeline_mode = #tpu.pipeline_mode<synchronous>, transform_indices = @transform_2, window_bounds = array<i64: 1, 64>}, {pipeline_mode = #tpu.pipeline_mode<synchronous>, transform_indices = @transform_3, window_bounds = array<i64: 64, 64>}, {pipeline_mode = #tpu.pipeline_mode<synchronous>, transform_indices = @transform_4, window_bounds = array<i64: 1, 64>}, {pipeline_mode = #tpu.pipeline_mode<synchronous>, transform_indices = @transform_5, window_bounds = array<i64: 1, 64>}, {transform_indices = @transform_6, window_bounds = array<i64: 1, 1>}, {transform_indices = @transform_7, window_bounds = array<i64: 16, 1>}]} {
    %c0 = arith.constant 0 : index
    %c0_0 = arith.constant 0 : index
    %0 = vector.load %arg1[%c0, %c0_0] : memref<16x9xbf16, #tpu.memory_space<vmem>>, vector<16x9xbf16>
    %c0_1 = arith.constant 0 : index
    %c0_2 = arith.constant 0 : index
    %1 = vector.load %arg2[%c0_1, %c0_2] : memref<9x64xbf16, #tpu.memory_space<vmem>>, vector<9x64xbf16>
    %cst = arith.constant dense<0.000000e+00> : vector<16x64xf32>
    %2 = tpu.matmul %0, %1, %cst {dimension_numbers = #tpu.dot_dimension_numbers<[1], [0], [0], [1], [0, 0, 1, 1], [], []>} : vector<16x9xbf16>, vector<9x64xbf16>, vector<16x64xf32> -> vector<16x64xf32>
    %c0_3 = arith.constant 0 : index
    %c0_4 = arith.constant 0 : index
    %3 = vector.load %arg3[%c0_3, %c0_4] : memref<1x64xf32, #tpu.memory_space<vmem>>, vector<1x64xf32>
    %4 = vector.broadcast %3 : vector<1x64xf32> to vector<16x64xf32>
    %5 = arith.addf %2, %4 : vector<16x64xf32>
    %cst_5 = arith.constant 0.000000e+00 : f32
    %6 = vector.broadcast %cst_5 : f32 to vector<16x64xf32>
    %7 = arith.maximumf %5, %6 : vector<16x64xf32>
    %8 = arith.truncf %7 : vector<16x64xf32> to vector<16x64xbf16>
    %c0_6 = arith.constant 0 : index
    %c0_7 = arith.constant 0 : index
    %9 = vector.load %arg4[%c0_6, %c0_7] : memref<64x64xbf16, #tpu.memory_space<vmem>>, vector<64x64xbf16>
    %cst_8 = arith.constant dense<0.000000e+00> : vector<16x64xf32>
    %10 = tpu.matmul %8, %9, %cst_8 {dimension_numbers = #tpu.dot_dimension_numbers<[1], [0], [0], [1], [0, 0, 1, 1], [], []>} : vector<16x64xbf16>, vector<64x64xbf16>, vector<16x64xf32> -> vector<16x64xf32>
    %c0_9 = arith.constant 0 : index
    %c0_10 = arith.constant 0 : index
    %11 = vector.load %arg5[%c0_9, %c0_10] : memref<1x64xf32, #tpu.memory_space<vmem>>, vector<1x64xf32>
    %12 = vector.broadcast %11 : vector<1x64xf32> to vector<16x64xf32>
    %13 = arith.addf %10, %12 : vector<16x64xf32>
    %cst_11 = arith.constant 0.000000e+00 : f32
    %14 = vector.broadcast %cst_11 : f32 to vector<16x64xf32>
    %15 = arith.maximumf %13, %14 : vector<16x64xf32>
    %c0_12 = arith.constant 0 : index
    %c0_13 = arith.constant 0 : index
    %16 = vector.load %arg6[%c0_12, %c0_13] : memref<1x64xf32, #tpu.memory_space<vmem>>, vector<1x64xf32>
    %17 = vector.broadcast %16 : vector<1x64xf32> to vector<16x64xf32>
    %18 = arith.mulf %15, %17 : vector<16x64xf32>
    %cst_14 = arith.constant dense<0.000000e+00> : vector<16xf32>
    %19 = vector.multi_reduction <add>, %18, %cst_14 [1] : vector<16x64xf32> to vector<16xf32>
    %20 = vector.shape_cast %19 : vector<16xf32> to vector<16x1xf32>
    %c0_15 = arith.constant 0 : index
    %c0_16 = arith.constant 0 : index
    %21 = memref.load %arg7[%c0_15, %c0_16] : memref<1x1xf32, #tpu.memory_space<smem>>
    %22 = vector.broadcast %21 : f32 to vector<16x1xf32>
    %23 = arith.addf %20, %22 : vector<16x1xf32>
    %c0_17 = arith.constant 0 : index
    %c0_18 = arith.constant 0 : index
    %24 = vector.load %arg8[%c0_17, %c0_18] : memref<16x1xf32, #tpu.memory_space<vmem>>, vector<16x1xf32>
    tpu.vector_store %arg8[%c0_17, %c0_18], %23 {strides = array<i32>} : memref<16x1xf32, #tpu.memory_space<vmem>>, vector<16x1xf32>,
    return
  }
  func.func @transform_0(%arg0: i32) -> (i32, i32) {
    %c0_i32 = arith.constant 0 : i32
    %c0_i32_0 = arith.constant 0 : i32
    return %arg0, %c0_i32 : i32, i32
  }
  func.func @transform_1(%arg0: i32) -> (i32, i32) {
    %c0_i32 = arith.constant 0 : i32
    %c0_i32_0 = arith.constant 0 : i32
    %c0_i32_1 = arith.constant 0 : i32
    return %c0_i32, %c0_i32_0 : i32, i32
  }
  func.func @transform_2(%arg0: i32) -> (i32, i32) {
    %c0_i32 = arith.constant 0 : i32
    %c0_i32_0 = arith.constant 0 : i32
    %c0_i32_1 = arith.constant 0 : i32
    return %c0_i32, %c0_i32_0 : i32, i32
  }
  func.func @transform_3(%arg0: i32) -> (i32, i32) {
    %c0_i32 = arith.constant 0 : i32
    %c0_i32_0 = arith.constant 0 : i32
    %c0_i32_1 = arith.constant 0 : i32
    return %c0_i32, %c0_i32_0 : i32, i32
  }
  func.func @transform_4(%arg0: i32) -> (i32, i32) {
    %c0_i32 = arith.constant 0 : i32
    %c0_i32_0 = arith.constant 0 : i32
    %c0_i32_1 = arith.constant 0 : i32
    return %c0_i32, %c0_i32_0 : i32, i32
  }
  func.func @transform_5(%arg0: i32) -> (i32, i32) {
    %c0_i32 = arith.constant 0 : i32
    %c0_i32_0 = arith.constant 0 : i32
    %c0_i32_1 = arith.constant 0 : i32
    return %c0_i32, %c0_i32_0 : i32, i32
  }
  func.func @transform_6(%arg0: i32) -> (i32, i32) {
    %c0_i32 = arith.constant 0 : i32
    %c0_i32_0 = arith.constant 0 : i32
    %c0_i32_1 = arith.constant 0 : i32
    return %c0_i32, %c0_i32_0 : i32, i32
  }
  func.func @transform_7(%arg0: i32) -> (i32, i32) {
    %c0_i32 = arith.constant 0 : i32
    %c0_i32_0 = arith.constant 0 : i32
    return %arg0, %c0_i32 : i32, i32
  }
}

</mosaic_0001>

<bundles_post_ra>
// kernel: tpu_custom_call.1
= control target key start
LH: loop header
LB: loop body
LE: loop exit
PB: predicated region body
PF: predicated region fallthrough
CT: control target
= control target key end

     0   :  { %s783_s0 = inlined_call_operand.vmem [shape: bf16[48,9], index: 0, kind: input, shape index: {}]   ;;  %s784_s1 = inlined_call_operand.hbm [shape: bf16[9,64], index: 1, kind: input, shape index: {}]   ;;  %s785_s2 = inlined_call_operand.vmem [shape: f32[1,64], index: 2, kind: input, shape index: {}]   ;;  %s786_s3 = inlined_call_operand.vmem [shape: bf16[64,64], index: 3, kind: input, shape index: {}]   ;;  %s787_s4 = inlined_call_operand.vmem [shape: f32[1,64], index: 4, kind: input, shape index: {}]   ;;  %s788_s5 = inlined_call_operand.vmem [shape: f32[1,64], index: 5, kind: input, shape index: {}]   ;;  %s789_s6 = inlined_call_operand.<no memory space> [shape: f32[1,1], index: 6, kind: input, shape index: {}]   ;;  %s790_s7 = inlined_call_operand.vmem [shape: f32[48,1], index: 7, kind: output, shape index: {}]  }
   0x1   :  { %12 = sst [smem:[#allocation2]] %s789_s6 }
   0x2   :  { %13 = vsyncpa [#allocation4], 0  ;;  %s717_s26 = smov 0  }
   0x3 LB: > { %s551_s27 = sadd.s32 4294967295, %s666_s26   ;;  %p553_p0 = scmp.ge.s32.totalorder %s666_s26, 1  ;;  %s666_s26 = sphi %s717_s26, %s19_s26  }
   0x4   : > { %p202_p1 = scmp.lt.s32.totalorder %s666_s26, 4  ;;  %s668_s28 = smov [#allocation3]  }
   0x5   : > { %s214_s29 = sshll.u32 %s668_s28, 4  ;;  %p729_p3 = scmp.eq.s32.totalorder %s551_s27, 0  ;;  %s215_s29 = int_to_ptr.vmem [resolvable:$true] %s214_s29 }
   0x6   : > { %p725_p2 = pnand %p553_p0, %p202_p1  ;;  %s641_s8 = scalar_lea.vmem %s215_s29, 128 }
   0x7   : > { %p642_p7 = scmp.ne.s32.totalorder %s215_s29, %s641_s8  ;;  %p649_p10 = scmp.lt.s32.totalorder %s215_s29, %s215_s29 }
   0x8   : > { %p604_p4 = pneg %p725_p2  ;;  %p650_p11 = scmp.lt.s32.totalorder %s641_s8, %s641_s8 }
   0xa   : > { %p605_p5 = pnand %p729_p3, %p604_p4  ;;  %p651_p12 = por %p650_p11, %p649_p10 }
   0xc   : > { %p632_p6 = pneg %p605_p5 }
   0xe   : > { %p644_p8 = pnand %p642_p7, %p632_p6 }
  0x10   : > { %p645_p9 = pneg %p644_p8 }
  0x12   : > { %p652_p13 = pnand %p651_p12, %p645_p9 }
  0x14   : > { %655 = shalt.err (!%p652_p13)
}
  0x15   : > { %s669_s9 = smov 64   ;;  %s670_s10 = smov 4  }
  0x16   : > { %607 = dma.hbm_to_vmem [thread:$0]  (!%p605_p5), %s784_s1, 128, %s215_s29, [#allocation4], %s669_s9, %s669_s9, %s670_s10  }
  0x17   : > { %254 = sbr.rel (%p725_p2) target bundleno = 586 (0x24a), region = 48 }
  0x1c   : > { %661 = dma.done.wait (%p729_p3), [#allocation4], 128  }
  0x1d   : > { %663 = vsyncadd (%p729_p3), [#allocation4], 4294967168  ;;  %vm324_vm0 = vcmask 1043456   ;;  %v671_v0 = vmov 0.0   ;;  %s558_s13 = sshll.u32 %s551_s27, 1  ;;  %vm672_vm1 = vmmov 0  }
  0x1e   : > { %582 = vmatprep.subr.bf16.mxu0 %v671_v0  ;;  %588 = vmatprep.subr.bf16.mxu1 %v671_v0  ;;  %p287_p0 = scmp.lt.s32.totalorder %s558_s13, 5  ;;  %vm325_vm2 = vcmask 1044480   ;;  %v673_v1 = vmov 65535   ;;  %v624_v4 = vld [vmem:[#allocation3] sm:$0x1f]   ;;  %v626_v6 = vld [vmem:[%s786_s3 + $0x18] sm:$0xff]  }
  0x1f   : > { %584 = vmatprep.mubr.msk.bf16.mxu0 %vm672_vm1, %v671_v0  ;;  %596 = vmatprep.mubr.msk.bf16.mxu1 %vm672_vm1, %v671_v0  ;;  %v326_v2 = vsel %vm324_vm0, 4294967295, %v673_v1  ;;  %vm320_vm3 = vcmask 72704   ;;  %v627_v8 = vld [vmem:[%s786_s3 + $0x10] sm:$0xff]   ;;  %v628_v9 = vld [vmem:[%s786_s3 + $0x8] sm:$0xff]   ;;  %v629_v10 = vld [vmem:[%s786_s3] sm:$0xff]   ;;  %vm414_vm4 = vcmask 523264  }
  0x20   : > { %s794_s13 = smov (!%p287_p0, %s558_s13), 5  ;;  %v327_v3 = vsel %vm325_vm2, %v326_v2, 0  ;;  %589 = vmatpush3.bf16.msra.mxu1 %v626_v6  ;;  %v562_v11 = vld [vmem:[%s785_s2] ss:$0 sm:$0xff]  ;;  %s476_s9 = sld [smem:[#allocation2]]  ;;  %vm480_vm5 = vcmask 7168  }
  0x21   : > { %s559_s14 = sshll.u32 %s794_s13, 2  ;;  %v329_v5 = vand.u32 %v624_v4, %v327_v3  ;;  %590 = vmatprep.subr.bf16.mxu1 %v671_v0  ;;  %v566_v21 = vld [vmem:[%s787_s4] ss:$0 sm:$0xff]  ;;  %s561_s10 = sshll.u32 %s794_s13, 3 }
  0x22   : > { %s290_s17 = scalar_lea.vmem %s783_s0, %s559_s14  ;;  %v572_v25 = vld [vmem:[%s788_s5] ss:$0 sm:$0xff]  ;;  %s296_s14 = scalar_lea.vmem %s790_s7, %s561_s10 }
  0x23   : > { %v625_v7 = vld [vmem:[%s290_s17] sm:$0xff]   ;;  %583 = vmatpush3.bf16.msra.mxu0 %v329_v5 }
  0x24   : > { %591 = vmatpush3.bf16.msra.mxu1 %v627_v8 }
  0x25   : > { %592 = vmatprep.subr.bf16.mxu1 %v671_v0 }
  0x26   : > { %585 = vmatmul.mubr.msk.bf16.vlgmr.msra.gmra.mxu0 %vm320_vm3, %v625_v7  ;;  %v477_v35 = vstv %s476_s9 }
  0x28   : > { %593 = vmatpush3.bf16.msra.mxu1 %v628_v9 }
  0x29   : > { %594 = vmatprep.subr.bf16.mxu1 %v671_v0 }
  0x2c   : > { %595 = vmatpush3.bf16.msra.mxu1 %v629_v10 }
  0xe6   : > { %v365_v12 = vpop.f32.mrf.mxu0 }
  0xe7   : > { %v366_v14 = vadd.f32 %v562_v11, %v365_v12 }
  0xe8   : > { %v586_v13 = vpop.f32.mrf.mxu0 }
  0xe9   : > { %v372_v18 = vmax.f32 %v366_v14, 0.0 }
  0xea   : > { %v368_v15 = vpop.f32.mrf.mxu0 }
  0xeb   : > { %v369_v16 = vadd.f32 %v562_v11, %v368_v15 }
  0xec   : > { %v587_v17 = vpop.f32.mrf.mxu0 }
  0xed   : > { %v373_v19 = vmax.f32 %v369_v16, 0.0 }
  0xef   : > { %v374_v20 = vpack.c.bf16 %v373_v19, %v372_v18 }
  0xf1   : > { %597 = vmatmul.mubr.msk.bf16.vlgmr.msra.gmra.mxu1 %vm414_vm4, %v374_v20 }
 0x1b1   : > { %v452_v22 = vpop.f32.mrf.mxu1 }
 0x1b2   : > { %v453_v23 = vadd.f32 %v566_v21, %v452_v22 }
 0x1b3   : > { %v598_v24 = vpop.f32.mrf.mxu1 }
 0x1b4   : > { %v459_v26 = vmax.f32 %v453_v23, 0.0 }
 0x1b5   : > { %v455_v27 = vpop.f32.mrf.mxu1 }
 0x1b6   : > { %v456_v28 = vadd.f32 %v566_v21, %v455_v27  ;;  %v468_v29 = vmul.f32 %v572_v25, %v459_v26 }
 0x1b7   : > { %v599_v30 = vpop.f32.mrf.mxu1 }
 0x1b8   : > { %v460_v31 = vmax.f32 %v456_v28, 0.0  ;;  %v470_v32 = vsel %vm414_vm4, %v468_v29, 0.0 }
 0x1b9   : > { %471 = vadd.xlane.f32.xlu0 %v470_v32 }
 0x1ba   : > { %v469_v33 = vmul.f32 %v572_v25, %v460_v31 }
 0x1bc   : > { %v473_v34 = vsel %vm414_vm4, %v469_v33, 0.0 }
 0x1bd   : > { %474 = vadd.xlane.f32.xlu0 %v473_v34 }
 0x242   : > { %v472_v36 = vpop.xlane.xlu0 %471 }
 0x243   : > { %v478_v37 = vadd.f32 %v477_v35, %v472_v36 }
 0x245   : > { %481 = vst.msk [vmem:[%s296_s14] sm:$0xff] %vm480_vm5, %v478_v37 }
 0x246   : > { %v475_v38 = vpop.xlane.xlu0 %474 }
 0x247   : > { %v479_v39 = vadd.f32 %v477_v35, %v475_v38 }
 0x249   : > { %482 = vst.msk [vmem:[%s296_s14 + $0x8] sm:$0xff] %vm480_vm5, %v479_v39 }
 0x24a PF: > { %s19_s26 = sadd.s32 1, %s666_s26  }
 0x24b   : > { %p16_p1 = scmp.ge.s32.totalorder %s19_s26, 5  }
 0x24d   :  { %18 = sbr.rel (!%p16_p1) target bundleno = 3 (0x3), region = 83 }
 0x252   :  { %505 = vsyncpa [#allocation4], 1 }
 0x253   :  { %507 = vsyncpa [#allocation4 + $0x1], 1 }

</bundles_post_ra>
